<compile_context>
chip_gen: v7x
topology: tpu7x:2x2x1
jax: 0.10.0
libtpu: 0.0.40
codegen_flags: <defaults>
</compile_context>

<pallas_src>
import functools

import jax
import jax.numpy as jnp
from jax import lax
from jax.experimental import pallas as pl
from jax.experimental.pallas import tpu as pltpu


def _round_up(n, m):
    return ((n + m - 1) // m) * m


def _vmem_capacity_bytes():
    try:
        return int(pltpu.get_tpu_info().vmem_capacity_bytes)
    except Exception:
        return 64 << 20  # conservative fallback: v7x per-TensorCore VMEM


def _default_use_bf16():
    # bf16 MXU inputs are the fast path on v6e / v7x; keep f32 elsewhere.
    try:
        kind = jax.devices()[0].device_kind.lower()
    except Exception:
        return False
    return ("v6" in kind) or ("v7" in kind)


def _mlp_kernel(layer_dims, use_bf16, x_ref, b_ref, *refs):
    """Forward pass for one batch tile; activations kept as (width, tile_b).

    x_ref : (tile_b, in_dim)            untransposed input tile
    b_ref : (max_width, n_layers) f32   packed biases; column l = bias of layer l
    refs  : (w_0, ..., w_{L-1}, out_ref)
            w_l    : (out_l, in_l)      native PyTorch nn.Linear layout
            out_ref: (out_dim, tile_b)  transposed output tile (lane = batch)
    """
    w_refs = refs[:-1]
    o_ref = refs[-1]
    n_layers = len(w_refs)
    compute_dtype = jnp.bfloat16 if use_bf16 else jnp.float32

    b_all = b_ref[...]                 # tiny; load once
    x = x_ref[...]
    if use_bf16:
        x = x.astype(compute_dtype)

    # Layer 0: contract on in_dim -> (out_0, tile_b); absorbs the x transpose.
    h = lax.dot_general(
        w_refs[0][...], x,
        dimension_numbers=(((1,), (1,)), ((), ())),
        preferred_element_type=jnp.float32)
    h = h + b_all[: layer_dims[1], 0:1]
    if n_layers > 1:
        h = jnp.tanh(h)

    for l in range(1, n_layers):
        hl = h.astype(compute_dtype) if use_bf16 else h
        h = jnp.dot(w_refs[l][...], hl, preferred_element_type=jnp.float32)
        h = h + b_all[: layer_dims[l + 1], l:l + 1]
        if l != n_layers - 1:          # activation on all but the last layer
            h = jnp.tanh(h)            # f32 tanh (EUP)

    o_ref[...] = h.astype(o_ref.dtype)


def mlp_forward(x, weights, biases, *, tile_b=None, use_bf16=None):
    """Run the MLP forward pass as a single Pallas kernel.

    x:       (B, layer_sizes[0]) float32
    weights: list of (out_l, in_l) arrays (native PyTorch nn.Linear layout)
    biases:  list of (out_l,) or (out_l, 1) arrays
    """
    if use_bf16 is None:
        use_bf16 = _default_use_bf16()
    compute_dtype = jnp.bfloat16 if use_bf16 else jnp.float32

    n_layers = len(weights)
    B, in_dim = x.shape
    assert weights[0].shape[1] == in_dim
    out_dim = int(weights[-1].shape[0])
    layer_dims = (in_dim,) + tuple(int(w.shape[0]) for w in weights)
    max_width = max(layer_dims)

    # --- parameters ----------------------------------------------------------
    ws = [w.astype(compute_dtype) for w in weights]
    b_packed = jnp.zeros((max_width, n_layers), jnp.float32)
    for l, b in enumerate(biases):
        col = jnp.reshape(b, (-1,)).astype(jnp.float32)
        b_packed = b_packed.at[: col.shape[0], l].set(col)

    # --- generation-aware VMEM budget & batch tiling -------------------------
    itemsize = 2 if use_bf16 else 4
    param_bytes = sum(int(w.size) for w in ws) * itemsize + int(b_packed.size) * 4
    # VMEM bytes needed per batch column:
    per_col = 2 * in_dim * 4          # input tile (double-buffered, f32)
    per_col += 2 * out_dim * 4        # output tile (double-buffered, f32)
    per_col += 2 * max_width * 4      # two live f32 activations
    per_col += max_width * itemsize   # bf16 cast copy of the live activation

    cap = _vmem_capacity_bytes()
    avail = int(0.75 * cap) - 2 * param_bytes - (2 << 20)
    tile_cap = (avail // per_col) // 128 * 128 if avail > 0 else 0
    tile_cap = max(128, min(1024, tile_cap))

    b128 = _round_up(B, 128)          # lane-dense: batch padded to >= 128
    if tile_b is None:
        if b128 <= 128:
            tile_b = 128              # single grid step (latency-bound regime)
        else:
            # >= 2 "parallel" grid steps so v7x megacore can shard the batch.
            tile_b = min(tile_cap, max(128, (b128 // 2) // 128 * 128))
    else:
        tile_b = min(tile_cap, max(128, (int(tile_b) // 128) * 128))

    b_pad = _round_up(B, tile_b)
    grid = (b_pad // tile_b,)

    need = 2 * param_bytes + per_col * tile_b + (4 << 20)
    vmem_limit = int(min(max(need, 8 << 20), 0.8 * cap))

    # --- operands -------------------------------------------------------------
    if b_pad != B:
        x = jnp.pad(x, ((0, b_pad - B), (0, 0)))

    kernel = functools.partial(_mlp_kernel, layer_dims, use_bf16)

    def call(params_single_buffered):
        def const_spec(shape):
            imap = lambda i, _s=shape: (0,) * len(_s)
            if params_single_buffered:
                return pl.BlockSpec(shape, imap, pipeline_mode=pl.Buffered(1))
            return pl.BlockSpec(shape, imap)

        in_specs = [pl.BlockSpec((tile_b, in_dim), lambda i: (i, 0)),
                    const_spec(b_packed.shape)]
        in_specs += [const_spec(w.shape) for w in ws]
        out_specs = pl.BlockSpec((out_dim, tile_b), lambda i: (0, i))

        return pl.pallas_call(
            kernel,
            out_shape=jax.ShapeDtypeStruct((out_dim, b_pad), x.dtype),
            grid_spec=pltpu.PrefetchScalarGridSpec(
                num_scalar_prefetch=0,
                grid=grid,
                in_specs=in_specs,
                out_specs=out_specs,
            ),
            compiler_params=pltpu.CompilerParams(
                dimension_semantics=("parallel",),
                vmem_limit_bytes=vmem_limit,
            ),
        )(x, b_packed, *ws)

    try:
        yt = call(params_single_buffered=True)
    except Exception:
        # Fallback if this Pallas build rejects single-buffered BlockSpecs.
        yt = call(params_single_buffered=False)

    # (out_dim, b_pad) -> (B, out_dim); the output slab is tiny (out_dim cols),
    # so this final transpose costs far less than a full activation HBM pass.
    return yt[:, :B].T


def init_params(layer_sizes, key):
    """torch.nn.Linear-style init: U(-1/sqrt(fan_in), +1/sqrt(fan_in))."""
    weights, biases = [], []
    for l in range(len(layer_sizes) - 1):
        fan_in, fan_out = layer_sizes[l], layer_sizes[l + 1]
        key, kw, kb = jax.random.split(key, 3)
        bound = 1.0 / float(fan_in) ** 0.5
        w = jax.random.uniform(kw, (fan_out, fan_in), jnp.float32, -bound, bound)
        b = jax.random.uniform(kb, (fan_out,), jnp.float32, -bound, bound)
        weights.append(w)
        biases.append(b)
    return weights, biases


def mlp_reference(x, weights, biases):
    h = x
    n = len(weights)
    for l, (w, b) in enumerate(zip(weights, biases)):
        h = h @ w.T + b
        if l != n - 1:
            h = jnp.tanh(h)
    return h


if __name__ == "__main__":
    # Small policy-gradient-style MLP: obs_dim=32, hidden=64, n_acts=8
    layer_sizes = [32, 64, 8]
    batch = 16

    key = jax.random.PRNGKey(0)
    key, kx = jax.random.split(key)
    x = jax.random.normal(kx, (batch, layer_sizes[0]), jnp.float32)
    weights, biases = init_params(layer_sizes, key)

    y_ref = mlp_reference(x, weights, biases)

    # Exact f32 path (tight tolerance).
    y32 = jax.block_until_ready(mlp_forward(x, weights, biases, use_bf16=False))
    assert y32.shape == (batch, layer_sizes[-1])
    assert jnp.allclose(y32, y_ref, atol=1e-5, rtol=1e-5), "f32 path mismatch"

    # Generation-default path (bf16 MXU inputs on v6e/v7x, f32 elsewhere).
    y_fast = jax.block_until_ready(mlp_forward(x, weights, biases))
    assert y_fast.shape == (batch, layer_sizes[-1])
    assert jnp.allclose(y_fast, y_ref, atol=5e-2, rtol=5e-2), "fast path mismatch"

    print("KERNEL_OK")
</pallas_src>

<mosaic_0001>
module attributes {stable_mosaic.version = 11 : i64} {
  func.func @_mlp_kernel(%arg0: i32, %arg1: memref<128x32xf32, #tpu.memory_space<vmem>>, %arg2: memref<64x2xf32, #tpu.memory_space<vmem>>, %arg3: memref<64x32xf32, #tpu.memory_space<vmem>>, %arg4: memref<8x64xf32, #tpu.memory_space<vmem>>, %arg5: memref<8x128xf32, #tpu.memory_space<vmem>>) attributes {dimension_semantics = [#tpu.dimension_semantics<parallel>], iteration_bounds = array<i64: 1>, scalar_prefetch = 0 : i64, scratch_operands = 0 : i64, tpu.core_type = #tpu.core_type<tc>, window_params = [{transform_indices = @transform_0, window_bounds = array<i64: 128, 32>}, {pipeline_mode = #tpu.pipeline_mode<synchronous>, transform_indices = @transform_1, window_bounds = array<i64: 64, 2>}, {pipeline_mode = #tpu.pipeline_mode<synchronous>, transform_indices = @transform_2, window_bounds = array<i64: 64, 32>}, {pipeline_mode = #tpu.pipeline_mode<synchronous>, transform_indices = @transform_3, window_bounds = array<i64: 8, 64>}, {transform_indices = @transform_4, window_bounds = array<i64: 8, 128>}]} {
    %c0 = arith.constant 0 : index
    %c0_0 = arith.constant 0 : index
    %0 = vector.load %arg2[%c0, %c0_0] : memref<64x2xf32, #tpu.memory_space<vmem>>, vector<64x2xf32>
    %c0_1 = arith.constant 0 : index
    %c0_2 = arith.constant 0 : index
    %1 = vector.load %arg1[%c0_1, %c0_2] : memref<128x32xf32, #tpu.memory_space<vmem>>, vector<128x32xf32>
    %c0_3 = arith.constant 0 : index
    %c0_4 = arith.constant 0 : index
    %2 = vector.load %arg3[%c0_3, %c0_4] : memref<64x32xf32, #tpu.memory_space<vmem>>, vector<64x32xf32>
    %cst = arith.constant dense<0.000000e+00> : vector<64x128xf32>
    %3 = tpu.matmul %2, %1, %cst {dimension_numbers = #tpu.dot_dimension_numbers<[1], [1], [0], [0], [0, 0, 1, 0], [], []>} : vector<64x32xf32>, vector<128x32xf32>, vector<64x128xf32> -> vector<64x128xf32>
    %4 = vector.extract_strided_slice %0 {offsets = [0, 0], sizes = [64, 1], strides = [1, 1]} : vector<64x2xf32> to vector<64x1xf32>
    %5 = vector.broadcast %4 : vector<64x1xf32> to vector<64x128xf32>
    %6 = arith.addf %3, %5 : vector<64x128xf32>
    %7 = math.tanh %6 : vector<64x128xf32>
    %c0_5 = arith.constant 0 : index
    %c0_6 = arith.constant 0 : index
    %8 = vector.load %arg4[%c0_5, %c0_6] : memref<8x64xf32, #tpu.memory_space<vmem>>, vector<8x64xf32>
    %cst_7 = arith.constant dense<0.000000e+00> : vector<8x128xf32>
    %9 = tpu.matmul %8, %7, %cst_7 {dimension_numbers = #tpu.dot_dimension_numbers<[1], [0], [0], [1], [0, 0, 1, 1], [], []>} : vector<8x64xf32>, vector<64x128xf32>, vector<8x128xf32> -> vector<8x128xf32>
    %10 = vector.extract_strided_slice %0 {offsets = [0, 1], sizes = [8, 1], strides = [1, 1]} : vector<64x2xf32> to vector<8x1xf32>
    %11 = vector.broadcast %10 : vector<8x1xf32> to vector<8x128xf32>
    %12 = arith.addf %9, %11 : vector<8x128xf32>
    %c0_8 = arith.constant 0 : index
    %c0_9 = arith.constant 0 : index
    %13 = vector.load %arg5[%c0_8, %c0_9] : memref<8x128xf32, #tpu.memory_space<vmem>>, vector<8x128xf32>
    tpu.vector_store %arg5[%c0_8, %c0_9], %12 {strides = array<i32>} : memref<8x128xf32, #tpu.memory_space<vmem>>, vector<8x128xf32>,
    return
  }
  func.func @transform_0(%arg0: i32) -> (i32, i32) {
    %c0_i32 = arith.constant 0 : i32
    %c0_i32_0 = arith.constant 0 : i32
    return %arg0, %c0_i32 : i32, i32
  }
  func.func @transform_1(%arg0: i32) -> (i32, i32) {
    %c0_i32 = arith.constant 0 : i32
    %c0_i32_0 = arith.constant 0 : i32
    %c0_i32_1 = arith.constant 0 : i32
    return %c0_i32, %c0_i32_0 : i32, i32
  }
  func.func @transform_2(%arg0: i32) -> (i32, i32) {
    %c0_i32 = arith.constant 0 : i32
    %c0_i32_0 = arith.constant 0 : i32
    %c0_i32_1 = arith.constant 0 : i32
    return %c0_i32, %c0_i32_0 : i32, i32
  }
  func.func @transform_3(%arg0: i32) -> (i32, i32) {
    %c0_i32 = arith.constant 0 : i32
    %c0_i32_0 = arith.constant 0 : i32
    %c0_i32_1 = arith.constant 0 : i32
    return %c0_i32, %c0_i32_0 : i32, i32
  }
  func.func @transform_4(%arg0: i32) -> (i32, i32) {
    %c0_i32 = arith.constant 0 : i32
    %c0_i32_0 = arith.constant 0 : i32
    return %c0_i32, %arg0 : i32, i32
  }
}

module attributes {stable_mosaic.version = 11 : i64} {
  func.func @_mlp_kernel(%arg0: i32, %arg1: memref<128x32xf32, #tpu.memory_space<vmem>>, %arg2: memref<64x2xf32, #tpu.memory_space<vmem>>, %arg3: memref<64x32xf32, #tpu.memory_space<vmem>>, %arg4: memref<8x64xf32, #tpu.memory_space<vmem>>, %arg5: memref<8x128xf32, #tpu.memory_space<vmem>>) attributes {dimension_semantics = [#tpu.dimension_semantics<parallel>], iteration_bounds = array<i64: 1>, scalar_prefetch = 0 : i64, scratch_operands = 0 : i64, tpu.core_type = #tpu.core_type<tc>, window_params = [{transform_indices = @transform_0, window_bounds = array<i64: 128, 32>}, {pipeline_mode = #tpu.pipeline_mode<synchronous>, transform_indices = @transform_1, window_bounds = array<i64: 64, 2>}, {pipeline_mode = #tpu.pipeline_mode<synchronous>, transform_indices = @transform_2, window_bounds = array<i64: 64, 32>}, {pipeline_mode = #tpu.pipeline_mode<synchronous>, transform_indices = @transform_3, window_bounds = array<i64: 8, 64>}, {transform_indices = @transform_4, window_bounds = array<i64: 8, 128>}]} {
    %c0 = arith.constant 0 : index
    %c0_0 = arith.constant 0 : index
    %0 = vector.load %arg2[%c0, %c0_0] : memref<64x2xf32, #tpu.memory_space<vmem>>, vector<64x2xf32>
    %c0_1 = arith.constant 0 : index
    %c0_2 = arith.constant 0 : index
    %1 = vector.load %arg1[%c0_1, %c0_2] : memref<128x32xf32, #tpu.memory_space<vmem>>, vector<128x32xf32>
    %c0_3 = arith.constant 0 : index
    %c0_4 = arith.constant 0 : index
    %2 = vector.load %arg3[%c0_3, %c0_4] : memref<64x32xf32, #tpu.memory_space<vmem>>, vector<64x32xf32>
    %cst = arith.constant dense<0.000000e+00> : vector<64x128xf32>
    %3 = tpu.matmul %2, %1, %cst {dimension_numbers = #tpu.dot_dimension_numbers<[1], [1], [0], [0], [0, 0, 1, 0], [], []>} : vector<64x32xf32>, vector<128x32xf32>, vector<64x128xf32> -> vector<64x128xf32>
    %4 = vector.extract_strided_slice %0 {offsets = [0, 0], sizes = [64, 1], strides = [1, 1]} : vector<64x2xf32> to vector<64x1xf32>
    %5 = vector.broadcast %4 : vector<64x1xf32> to vector<64x128xf32>
    %6 = arith.addf %3, %5 : vector<64x128xf32>
    %7 = math.tanh %6 : vector<64x128xf32>
    %c0_5 = arith.constant 0 : index
    %c0_6 = arith.constant 0 : index
    %8 = vector.load %arg4[%c0_5, %c0_6] : memref<8x64xf32, #tpu.memory_space<vmem>>, vector<8x64xf32>
    %cst_7 = arith.constant dense<0.000000e+00> : vector<8x128xf32>
    %9 = tpu.matmul %8, %7, %cst_7 {dimension_numbers = #tpu.dot_dimension_numbers<[1], [0], [0], [1], [0, 0, 1, 1], [], []>} : vector<8x64xf32>, vector<64x128xf32>, vector<8x128xf32> -> vector<8x128xf32>
    %10 = vector.extract_strided_slice %0 {offsets = [0, 1], sizes = [8, 1], strides = [1, 1]} : vector<64x2xf32> to vector<8x1xf32>
    %11 = vector.broadcast %10 : vector<8x1xf32> to vector<8x128xf32>
    %12 = arith.addf %9, %11 : vector<8x128xf32>
    %c0_8 = arith.constant 0 : index
    %c0_9 = arith.constant 0 : index
    %13 = vector.load %arg5[%c0_8, %c0_9] : memref<8x128xf32, #tpu.memory_space<vmem>>, vector<8x128xf32>
    tpu.vector_store %arg5[%c0_8, %c0_9], %12 {strides = array<i32>} : memref<8x128xf32, #tpu.memory_space<vmem>>, vector<8x128xf32>,
    return
  }
  func.func @transform_0(%arg0: i32) -> (i32, i32) {
    %c0_i32 = arith.constant 0 : i32
    %c0_i32_0 = arith.constant 0 : i32
    return %arg0, %c0_i32 : i32, i32
  }
  func.func @transform_1(%arg0: i32) -> (i32, i32) {
    %c0_i32 = arith.constant 0 : i32
    %c0_i32_0 = arith.constant 0 : i32
    %c0_i32_1 = arith.constant 0 : i32
    return %c0_i32, %c0_i32_0 : i32, i32
  }
  func.func @transform_2(%arg0: i32) -> (i32, i32) {
    %c0_i32 = arith.constant 0 : i32
    %c0_i32_0 = arith.constant 0 : i32
    %c0_i32_1 = arith.constant 0 : i32
    return %c0_i32, %c0_i32_0 : i32, i32
  }
  func.func @transform_3(%arg0: i32) -> (i32, i32) {
    %c0_i32 = arith.constant 0 : i32
    %c0_i32_0 = arith.constant 0 : i32
    %c0_i32_1 = arith.constant 0 : i32
    return %c0_i32, %c0_i32_0 : i32, i32
  }
  func.func @transform_4(%arg0: i32) -> (i32, i32) {
    %c0_i32 = arith.constant 0 : i32
    %c0_i32_0 = arith.constant 0 : i32
    return %c0_i32, %arg0 : i32, i32
  }
}

</mosaic_0001>

<bundles_post_ra>
// kernel: tpu_custom_call.1
= control target key start
LH: loop header
LB: loop body
LE: loop exit
PB: predicated region body
PF: predicated region fallthrough
CT: control target
= control target key end

     0   :  { %vm90_vm0 = vcmask 261120   ;;  %v600_v6 = vmov 0   ;;  %s792_s0 = inlined_call_operand.vmem [shape: f32[128,32], index: 0, kind: input, shape index: {}]   ;;  %s793_s1 = inlined_call_operand.vmem [shape: f32[64,2], index: 1, kind: input, shape index: {}]   ;;  %s794_s2 = inlined_call_operand.vmem [shape: f32[64,32], index: 2, kind: input, shape index: {}]   ;;  %s795_s3 = inlined_call_operand.vmem [shape: f32[8,64], index: 3, kind: input, shape index: {}]   ;;  %s796_s4 = inlined_call_operand.hbm [shape: f32[8,128], index: 4, kind: output, shape index: {}]  }
   0x1   :  { %v26_v0 = vld [vmem:[%s792_s0] sm:$0xff]  ;;  %v27_v1 = vld [vmem:[%s792_s0 + $0x8] sm:$0xff]  ;;  %v28_v2 = vld [vmem:[%s792_s0 + $0x10] sm:$0xff]  ;;  %557 = vset.pattern.permute.xlu0 %v600_v6  ;;  %558 = vset.pattern.permute.xlu1 %v600_v6 }
   0x2   :  { %v491_v3 = vpack.c.bf16 %v27_v1, %v26_v0  ;;  %vm642_vm1 = vmpackc.low %vm90_vm0, %vm90_vm0  ;;  %v29_v5 = vld [vmem:[%s792_s0 + $0x18] sm:$0xff]  ;;  %v42_v8 = vld [vmem:[%s794_s2] sm:$0xff] }
   0x3   :  { %v497_v7 = vpack.c.bf16 %v29_v5, %v28_v2  ;;  %v30_v9 = vld [vmem:[%s792_s0 + $0x20] sm:$0xff]  ;;  %v31_v10 = vld [vmem:[%s792_s0 + $0x28] sm:$0xff]  ;;  %460 = vmatprep.mubr.msk.f32.mxu0 %vm90_vm0, %v42_v8  ;;  %v20_v12 = vld [vmem:[%s793_s1 + $0x10] sm:$0xff] }
   0x4   :  { %493 = vmatprep.subr.msk.bf16.mxu0 %vm642_vm1, %v491_v3  ;;  %v668_v11 = vld [vmem:[%s793_s1] sm:$0xff]  ;;  %v503_v13 = vpack.c.bf16 %v31_v10, %v30_v9  ;;  %62 = vperm.xlu1 %558, %v20_v12   ;;  %v19_v14 = vld [vmem:[%s793_s1 + $0x8] sm:$0xff]  ;;  %v21_v15 = vld [vmem:[%s793_s1 + $0x18] sm:$0xff] }
   0x5   :  { %496 = vmatpush3.bf16.xpose.msk.msra.mxu0 %vm642_vm1, %v491_v3  ;;  %52 = vperm.xlu0 %557, %v668_v11  }
   0x6   :  { %499 = vmatprep.subr.msk.bf16.mxu0 %vm642_vm1, %v497_v7 }
   0x7   :  { %9 = vsyncpa [#allocation3], 0  ;;  %v32_v16 = vld [vmem:[%s792_s0 + $0x30] sm:$0xff]  ;;  %v33_v17 = vld [vmem:[%s792_s0 + $0x38] sm:$0xff]  ;;  %v601_v42 = vmov 0.0|0.0   ;;  %vm602_vm2 = vmmov 0  }
   0x8   :  { %67 = vperm.xlu1 %558, %v21_v15   ;;  %v22_v18 = vld [vmem:[%s793_s1 + $0x20] sm:$0xff]  ;;  %v23_v19 = vld [vmem:[%s793_s1 + $0x28] sm:$0xff]  ;;  %v509_v20 = vpack.c.bf16 %v33_v17, %v32_v16  ;;  %v24_v21 = vld [vmem:[%s793_s1 + $0x30] sm:$0xff]  ;;  %539 = vmatprep.subr.bf16.mxu1 %v601_v42  ;;  %v603_v43 = vmov 0.0   ;;  %v604_v44 = vmov 1   ;;  %vm281_vm3 = vcmask 523264  }
   0x9   :  { %57 = vperm.xlu0 %557, %v19_v14   ;;  %v25_v22 = vld [vmem:[%s793_s1 + $0x38] sm:$0xff]  ;;  %v34_v23 = vld [vmem:[%s792_s0 + $0x40] sm:$0xff]  ;;  %v35_v24 = vld [vmem:[%s792_s0 + $0x48] sm:$0xff]  ;;  %488 = vmatprep.mubr.msk.f32.mxu1 %vm602_vm2, %v603_v43  ;;  %s605_s26 = smov [#allocation2]  }
   0xa   :  { %v515_v25 = vpack.c.bf16 %v35_v24, %v34_v23  ;;  %v36_v26 = vld [vmem:[%s792_s0 + $0x50] sm:$0xff]  ;;  %v37_v27 = vld [vmem:[%s792_s0 + $0x58] sm:$0xff]  ;;  %v38_v29 = vld [vmem:[%s792_s0 + $0x60] sm:$0xff]  ;;  %s362_s1 = sshll.u32 %s605_s26, 4  ;;  %s363_s1 = int_to_ptr.vmem [resolvable:$true] %s362_s1 }
   0xb   :  { %v521_v28 = vpack.c.bf16 %v37_v27, %v36_v26  ;;  %v39_v30 = vld [vmem:[%s792_s0 + $0x68] sm:$0xff]  ;;  %v40_v32 = vld [vmem:[%s792_s0 + $0x70] sm:$0xff]  ;;  %v41_v33 = vld [vmem:[%s792_s0 + $0x78] sm:$0xff]  ;;  %s576_s27 = scalar_lea.vmem %s363_s1, 128  ;;  %p581_p1 = scmp.lt.s32.totalorder %s363_s1, %s363_s1 }
   0xc   :  { %77 = vperm.xlu1 %558, %v23_v19   ;;  %v527_v31 = vpack.c.bf16 %v39_v30, %v38_v29  ;;  %v533_v34 = vpack.c.bf16 %v41_v33, %v40_v32  ;;  %v43_v35 = vld [vmem:[%s794_s2 + $0x8] sm:$0xff]  ;;  %v44_v36 = vld [vmem:[%s794_s2 + $0x10] sm:$0xff]  ;;  %v45_v37 = vld [vmem:[%s794_s2 + $0x18] sm:$0xff]  ;;  %p577_p0 = scmp.ne.s32.totalorder %s363_s1, %s576_s27  ;;  %p582_p2 = scmp.lt.s32.totalorder %s576_s27, %s576_s27 }
   0xd   :  { %502 = vmatpush3.bf16.xpose.msk.msra.mxu0 %vm642_vm1, %v497_v7  ;;  %72 = vperm.xlu0 %557, %v22_v18   ;;  %v46_v38 = vld [vmem:[%s794_s2 + $0x20] sm:$0xff]  ;;  %v47_v39 = vld [vmem:[%s794_s2 + $0x28] sm:$0xff]  ;;  %v48_v40 = vld [vmem:[%s794_s2 + $0x30] sm:$0xff] }
   0xe   :  { %505 = vmatprep.subr.msk.bf16.mxu0 %vm642_vm1, %v503_v13  ;;  %v49_v41 = vld [vmem:[%s794_s2 + $0x38] sm:$0xff]  ;;  %v276_v17 = vld [vmem:[%s795_s3] sm:$0xff]  ;;  %p583_p3 = por %p582_p2, %p581_p1 }
  0x10   :  { %87 = vperm.xlu1 %558, %v25_v22   ;;  %p584_p4 = pnand %p583_p3, %p577_p0 }
  0x11   :  { %82 = vperm.xlu0 %557, %v24_v21  }
  0x15   :  { %508 = vmatpush3.bf16.xpose.msk.msra.mxu0 %vm642_vm1, %v503_v13  ;;  %559 = vset.pattern.permute.xlu0 %v604_v44 }
  0x16   :  { %511 = vmatprep.subr.msk.bf16.mxu0 %vm642_vm1, %v509_v20  ;;  %278 = vperm.xlu0 %559, %v668_v11  }
  0x1d   :  { %514 = vmatpush3.bf16.xpose.msk.msra.mxu0 %vm642_vm1, %v509_v20 }
  0x1e   :  { %517 = vmatprep.subr.msk.bf16.mxu0 %vm642_vm1, %v515_v25 }
  0x25   :  { %520 = vmatpush3.bf16.xpose.msk.msra.mxu0 %vm642_vm1, %v515_v25 }
  0x26   :  { %523 = vmatprep.subr.msk.bf16.mxu0 %vm642_vm1, %v521_v28 }
  0x2d   :  { %526 = vmatpush3.bf16.xpose.msk.msra.mxu0 %vm642_vm1, %v521_v28 }
  0x2e   :  { %529 = vmatprep.subr.msk.bf16.mxu0 %vm642_vm1, %v527_v31 }
  0x35   :  { %532 = vmatpush3.bf16.xpose.msk.msra.mxu0 %vm642_vm1, %v527_v31 }
  0x36   :  { %535 = vmatprep.subr.msk.bf16.mxu0 %vm642_vm1, %v533_v34 }
  0x3d   :  { %538 = vmatpush3.bf16.xpose.msk.msra.mxu0 %vm642_vm1, %v533_v34 }
  0x44   :  { %461 = vmatmul.mubr.msk.f32.vlgmr.msra.gmra.mrb[0].mxu0 %vm90_vm0, %v43_v35 }
  0x45   :  { %463 = vmatprep.mubr.msk.f32.mxu0 %vm90_vm0, %v44_v36 }
  0x48   :  { %464 = vmatmul.mubr.msk.f32.gmra.mrb[2].mxu0 %vm90_vm0, %v45_v37 }
  0x49   :  { %466 = vmatprep.mubr.msk.f32.mxu0 %vm90_vm0, %v46_v38 }
  0x4c   :  { %467 = vmatmul.mubr.msk.f32.gmra.mrb[4].mxu0 %vm90_vm0, %v47_v39 }
  0x4d   :  { %469 = vmatprep.mubr.msk.f32.mxu0 %vm90_vm0, %v48_v40 }
  0x50   :  { %470 = vmatmul.mubr.msk.f32.gmra.mrb[6].mxu0 %vm90_vm0, %v49_v41 }
  0x83   :  { %v63_v46 = vpop.permute.xlu1 %62 }
  0x84   :  { %v53_v45 = vpop.permute.xlu0 %52 }
  0x87   :  { %v68_v48 = vpop.permute.xlu1 %67 }
  0x88   :  { %v58_v47 = vpop.permute.xlu0 %57 }
  0x8b   :  { %v78_v56 = vpop.permute.xlu1 %77 }
  0x8c   :  { %v73_v58 = vpop.permute.xlu0 %72 }
  0x8f   :  { %v88_v63 = vpop.permute.xlu1 %87 }
  0x90   :  { %v83_v2 = vpop.permute.xlu0 %82 }
  0x95   :  { %v279_v18 = vpop.permute.xlu0 %278 }
 0x117   :  { %v462_v49 = vpop.f32.mrb[0].mxu0 }
 0x118   :  { %v235_v50 = vadd.f32 %v462_v49, %v58_v47  ;;  %v229_v51 = vpop.f32.mrb[1].mxu0 }
 0x119   :  { %v230_v52 = vadd.f32 %v229_v51, %v53_v45 }
 0x11a   :  { %560 = vtanh.f32 %v235_v50 }
 0x11b   :  { %562 = vtanh.f32 %v230_v52  ;;  %v465_v53 = vpop.f32.mrb[2].mxu0 }
 0x11c   :  { %v245_v54 = vadd.f32 %v465_v53, %v68_v48  ;;  %v239_v55 = vpop.f32.mrb[3].mxu0 }
 0x11d   :  { %v240_v57 = vadd.f32 %v239_v55, %v63_v46 }
 0x11e   :  { %564 = vtanh.f32 %v245_v54 }
 0x11f   :  { %566 = vtanh.f32 %v240_v57  ;;  %v468_v59 = vpop.f32.mrb[4].mxu0 }
 0x120   :  { %v255_v60 = vadd.f32 %v468_v59, %v78_v56  ;;  %v249_v61 = vpop.f32.mrb[5].mxu0 }
 0x121   :  { %v250_v62 = vadd.f32 %v249_v61, %v73_v58 }
 0x122   :  { %568 = vtanh.f32 %v255_v60 }
 0x123   :  { %570 = vtanh.f32 %v250_v62  ;;  %v471_v0 = vpop.f32.mrb[6].mxu0 }
 0x124   :  { %v561_v1 = vpop.eup %560  ;;  %v265_v3 = vadd.f32 %v471_v0, %v88_v63  ;;  %v259_v4 = vpop.f32.mrb[7].mxu0 }
 0x125   :  { %v563_v5 = vpop.eup %562  ;;  %v260_v6 = vadd.f32 %v259_v4, %v83_v2 }
 0x126   :  { %572 = vtanh.f32 %v265_v3  ;;  %v540_v7 = vpack.c.bf16 %v561_v1, %v563_v5 }
 0x127   :  { %574 = vtanh.f32 %v260_v6 }
 0x128   :  { %v565_v8 = vpop.eup %564  ;;  %541 = vmatpush3.bf16.msra.mxu1 %v540_v7 }
 0x129   :  { %v567_v9 = vpop.eup %566  ;;  %542 = vmatprep.subr.bf16.mxu1 %v601_v42 }
 0x12a   :  { %v543_v10 = vpack.c.bf16 %v565_v8, %v567_v9 }
 0x12c   :  { %v569_v11 = vpop.eup %568  ;;  %544 = vmatpush3.bf16.msra.mxu1 %v543_v10 }
 0x12d   :  { %v571_v12 = vpop.eup %570  ;;  %545 = vmatprep.subr.bf16.mxu1 %v601_v42 }
 0x12e   :  { %v546_v13 = vpack.c.bf16 %v569_v11, %v571_v12 }
 0x130   :  { %v573_v14 = vpop.eup %572  ;;  %547 = vmatpush3.bf16.msra.mxu1 %v546_v13 }
 0x131   :  { %v575_v15 = vpop.eup %574  ;;  %548 = vmatprep.subr.bf16.mxu1 %v601_v42 }
 0x132   :  { %v549_v16 = vpack.c.bf16 %v573_v14, %v575_v15 }
 0x134   :  { %550 = vmatpush3.bf16.msra.mxu1 %v549_v16 }
 0x137   :  { %489 = vmatmul.mubr.msk.f32.vlgmr.msra.gmra.mrb[0].mxu1 %vm281_vm3, %v276_v17 }
 0x20a   :  { %v351_v19 = vpop.f32.mrb[0].mxu1 }
 0x20b   :  { %v352_v20 = vadd.f32 %v351_v19, %v279_v18  ;;  %v490_v21 = vpop.f32.mrb[1].mxu1 }
 0x20d   :  { %355 = vst [vmem:[#allocation2] sm:$0xff] %v352_v20 }
 0x20e   :  { %587 = shalt.err (!%p584_p4)
}
 0x20f   :  { %s588_s3 = scalar_lea.hbm %s796_s4, 128 }
 0x210   :  { %p589_p5 = scmp.ne.s32.totalorder %s796_s4, %s588_s3  ;;  %p592_p6 = scmp.lt.u32.totalorder %s588_s3, %s796_s4 }
 0x212   :  { %p594_p7 = pnand %p592_p6, %p589_p5 }
 0x214   :  { %597 = shalt.err (!%p594_p7)
}
 0x215   :  { %365 = dma.vmem_to_hbm [thread:$0]  %s363_s1, 128, %s796_s4, [#allocation3]  }
 0x216   :  { %598 = dma.done.wait [#allocation3], 128  }
 0x217   :  { %599 = vsyncadd [#allocation3], 4294967168 }
 0x218   :  { %369 = vsyncpa [#allocation3], 1 }

// kernel: tpu_custom_call.1
= control target key start
LH: loop header
LB: loop body
LE: loop exit
PB: predicated region body
PF: predicated region fallthrough
CT: control target
= control target key end

     0   :  { %vm90_vm0 = vcmask 261120   ;;  %v600_v6 = vmov 0   ;;  %s792_s0 = inlined_call_operand.vmem [shape: f32[128,32], index: 0, kind: input, shape index: {}]   ;;  %s793_s1 = inlined_call_operand.vmem [shape: f32[64,2], index: 1, kind: input, shape index: {}]   ;;  %s794_s2 = inlined_call_operand.vmem [shape: f32[64,32], index: 2, kind: input, shape index: {}]   ;;  %s795_s3 = inlined_call_operand.vmem [shape: f32[8,64], index: 3, kind: input, shape index: {}]   ;;  %s796_s4 = inlined_call_operand.hbm [shape: f32[8,128], index: 4, kind: output, shape index: {}]  }
   0x1   :  { %v26_v0 = vld [vmem:[%s792_s0] sm:$0xff]  ;;  %v27_v1 = vld [vmem:[%s792_s0 + $0x8] sm:$0xff]  ;;  %v28_v2 = vld [vmem:[%s792_s0 + $0x10] sm:$0xff]  ;;  %557 = vset.pattern.permute.xlu0 %v600_v6  ;;  %558 = vset.pattern.permute.xlu1 %v600_v6 }
   0x2   :  { %v491_v3 = vpack.c.bf16 %v27_v1, %v26_v0  ;;  %vm642_vm1 = vmpackc.low %vm90_vm0, %vm90_vm0  ;;  %v29_v5 = vld [vmem:[%s792_s0 + $0x18] sm:$0xff]  ;;  %v42_v8 = vld [vmem:[%s794_s2] sm:$0xff] }
   0x3   :  { %v497_v7 = vpack.c.bf16 %v29_v5, %v28_v2  ;;  %v30_v9 = vld [vmem:[%s792_s0 + $0x20] sm:$0xff]  ;;  %v31_v10 = vld [vmem:[%s792_s0 + $0x28] sm:$0xff]  ;;  %460 = vmatprep.mubr.msk.f32.mxu0 %vm90_vm0, %v42_v8  ;;  %v20_v12 = vld [vmem:[%s793_s1 + $0x10] sm:$0xff] }
   0x4   :  { %493 = vmatprep.subr.msk.bf16.mxu0 %vm642_vm1, %v491_v3  ;;  %v668_v11 = vld [vmem:[%s793_s1] sm:$0xff]  ;;  %v503_v13 = vpack.c.bf16 %v31_v10, %v30_v9  ;;  %62 = vperm.xlu1 %558, %v20_v12   ;;  %v19_v14 = vld [vmem:[%s793_s1 + $0x8] sm:$0xff]  ;;  %v21_v15 = vld [vmem:[%s793_s1 + $0x18] sm:$0xff] }
   0x5   :  { %496 = vmatpush3.bf16.xpose.msk.msra.mxu0 %vm642_vm1, %v491_v3  ;;  %52 = vperm.xlu0 %557, %v668_v11  }
   0x6   :  { %499 = vmatprep.subr.msk.bf16.mxu0 %vm642_vm1, %v497_v7 }
   0x7   :  { %9 = vsyncpa [#allocation3], 0  ;;  %v32_v16 = vld [vmem:[%s792_s0 + $0x30] sm:$0xff]  ;;  %v33_v17 = vld [vmem:[%s792_s0 + $0x38] sm:$0xff]  ;;  %v601_v42 = vmov 0.0|0.0   ;;  %vm602_vm2 = vmmov 0  }
   0x8   :  { %67 = vperm.xlu1 %558, %v21_v15   ;;  %v22_v18 = vld [vmem:[%s793_s1 + $0x20] sm:$0xff]  ;;  %v23_v19 = vld [vmem:[%s793_s1 + $0x28] sm:$0xff]  ;;  %v509_v20 = vpack.c.bf16 %v33_v17, %v32_v16  ;;  %v24_v21 = vld [vmem:[%s793_s1 + $0x30] sm:$0xff]  ;;  %539 = vmatprep.subr.bf16.mxu1 %v601_v42  ;;  %v603_v43 = vmov 0.0   ;;  %v604_v44 = vmov 1   ;;  %vm281_vm3 = vcmask 523264  }
   0x9   :  { %57 = vperm.xlu0 %557, %v19_v14   ;;  %v25_v22 = vld [vmem:[%s793_s1 + $0x38] sm:$0xff]  ;;  %v34_v23 = vld [vmem:[%s792_s0 + $0x40] sm:$0xff]  ;;  %v35_v24 = vld [vmem:[%s792_s0 + $0x48] sm:$0xff]  ;;  %488 = vmatprep.mubr.msk.f32.mxu1 %vm602_vm2, %v603_v43  ;;  %s605_s26 = smov [#allocation2]  }
   0xa   :  { %v515_v25 = vpack.c.bf16 %v35_v24, %v34_v23  ;;  %v36_v26 = vld [vmem:[%s792_s0 + $0x50] sm:$0xff]  ;;  %v37_v27 = vld [vmem:[%s792_s0 + $0x58] sm:$0xff]  ;;  %v38_v29 = vld [vmem:[%s792_s0 + $0x60] sm:$0xff]  ;;  %s362_s1 = sshll.u32 %s605_s26, 4  ;;  %s363_s1 = int_to_ptr.vmem [resolvable:$true] %s362_s1 }
   0xb   :  { %v521_v28 = vpack.c.bf16 %v37_v27, %v36_v26  ;;  %v39_v30 = vld [vmem:[%s792_s0 + $0x68] sm:$0xff]  ;;  %v40_v32 = vld [vmem:[%s792_s0 + $0x70] sm:$0xff]  ;;  %v41_v33 = vld [vmem:[%s792_s0 + $0x78] sm:$0xff]  ;;  %s576_s27 = scalar_lea.vmem %s363_s1, 128  ;;  %p581_p1 = scmp.lt.s32.totalorder %s363_s1, %s363_s1 }
   0xc   :  { %77 = vperm.xlu1 %558, %v23_v19   ;;  %v527_v31 = vpack.c.bf16 %v39_v30, %v38_v29  ;;  %v533_v34 = vpack.c.bf16 %v41_v33, %v40_v32  ;;  %v43_v35 = vld [vmem:[%s794_s2 + $0x8] sm:$0xff]  ;;  %v44_v36 = vld [vmem:[%s794_s2 + $0x10] sm:$0xff]  ;;  %v45_v37 = vld [vmem:[%s794_s2 + $0x18] sm:$0xff]  ;;  %p577_p0 = scmp.ne.s32.totalorder %s363_s1, %s576_s27  ;;  %p582_p2 = scmp.lt.s32.totalorder %s576_s27, %s576_s27 }
   0xd   :  { %502 = vmatpush3.bf16.xpose.msk.msra.mxu0 %vm642_vm1, %v497_v7  ;;  %72 = vperm.xlu0 %557, %v22_v18   ;;  %v46_v38 = vld [vmem:[%s794_s2 + $0x20] sm:$0xff]  ;;  %v47_v39 = vld [vmem:[%s794_s2 + $0x28] sm:$0xff]  ;;  %v48_v40 = vld [vmem:[%s794_s2 + $0x30] sm:$0xff] }
   0xe   :  { %505 = vmatprep.subr.msk.bf16.mxu0 %vm642_vm1, %v503_v13  ;;  %v49_v41 = vld [vmem:[%s794_s2 + $0x38] sm:$0xff]  ;;  %v276_v17 = vld [vmem:[%s795_s3] sm:$0xff]  ;;  %p583_p3 = por %p582_p2, %p581_p1 }
  0x10   :  { %87 = vperm.xlu1 %558, %v25_v22   ;;  %p584_p4 = pnand %p583_p3, %p577_p0 }
  0x11   :  { %82 = vperm.xlu0 %557, %v24_v21  }
  0x15   :  { %508 = vmatpush3.bf16.xpose.msk.msra.mxu0 %vm642_vm1, %v503_v13  ;;  %559 = vset.pattern.permute.xlu0 %v604_v44 }
  0x16   :  { %511 = vmatprep.subr.msk.bf16.mxu0 %vm642_vm1, %v509_v20  ;;  %278 = vperm.xlu0 %559, %v668_v11  }
  0x1d   :  { %514 = vmatpush3.bf16.xpose.msk.msra.mxu0 %vm642_vm1, %v509_v20 }
  0x1e   :  { %517 = vmatprep.subr.msk.bf16.mxu0 %vm642_vm1, %v515_v25 }
  0x25   :  { %520 = vmatpush3.bf16.xpose.msk.msra.mxu0 %vm642_vm1, %v515_v25 }
  0x26   :  { %523 = vmatprep.subr.msk.bf16.mxu0 %vm642_vm1, %v521_v28 }
  0x2d   :  { %526 = vmatpush3.bf16.xpose.msk.msra.mxu0 %vm642_vm1, %v521_v28 }
  0x2e   :  { %529 = vmatprep.subr.msk.bf16.mxu0 %vm642_vm1, %v527_v31 }
  0x35   :  { %532 = vmatpush3.bf16.xpose.msk.msra.mxu0 %vm642_vm1, %v527_v31 }
  0x36   :  { %535 = vmatprep.subr.msk.bf16.mxu0 %vm642_vm1, %v533_v34 }
  0x3d   :  { %538 = vmatpush3.bf16.xpose.msk.msra.mxu0 %vm642_vm1, %v533_v34 }
  0x44   :  { %461 = vmatmul.mubr.msk.f32.vlgmr.msra.gmra.mrb[0].mxu0 %vm90_vm0, %v43_v35 }
  0x45   :  { %463 = vmatprep.mubr.msk.f32.mxu0 %vm90_vm0, %v44_v36 }
  0x48   :  { %464 = vmatmul.mubr.msk.f32.gmra.mrb[2].mxu0 %vm90_vm0, %v45_v37 }
  0x49   :  { %466 = vmatprep.mubr.msk.f32.mxu0 %vm90_vm0, %v46_v38 }
  0x4c   :  { %467 = vmatmul.mubr.msk.f32.gmra.mrb[4].mxu0 %vm90_vm0, %v47_v39 }
  0x4d   :  { %469 = vmatprep.mubr.msk.f32.mxu0 %vm90_vm0, %v48_v40 }
  0x50   :  { %470 = vmatmul.mubr.msk.f32.gmra.mrb[6].mxu0 %vm90_vm0, %v49_v41 }
  0x83   :  { %v63_v46 = vpop.permute.xlu1 %62 }
  0x84   :  { %v53_v45 = vpop.permute.xlu0 %52 }
  0x87   :  { %v68_v48 = vpop.permute.xlu1 %67 }
  0x88   :  { %v58_v47 = vpop.permute.xlu0 %57 }
  0x8b   :  { %v78_v56 = vpop.permute.xlu1 %77 }
  0x8c   :  { %v73_v58 = vpop.permute.xlu0 %72 }
  0x8f   :  { %v88_v63 = vpop.permute.xlu1 %87 }
  0x90   :  { %v83_v2 = vpop.permute.xlu0 %82 }
  0x95   :  { %v279_v18 = vpop.permute.xlu0 %278 }
 0x117   :  { %v462_v49 = vpop.f32.mrb[0].mxu0 }
 0x118   :  { %v235_v50 = vadd.f32 %v462_v49, %v58_v47  ;;  %v229_v51 = vpop.f32.mrb[1].mxu0 }
 0x119   :  { %v230_v52 = vadd.f32 %v229_v51, %v53_v45 }
 0x11a   :  { %560 = vtanh.f32 %v235_v50 }
 0x11b   :  { %562 = vtanh.f32 %v230_v52  ;;  %v465_v53 = vpop.f32.mrb[2].mxu0 }
 0x11c   :  { %v245_v54 = vadd.f32 %v465_v53, %v68_v48  ;;  %v239_v55 = vpop.f32.mrb[3].mxu0 }
 0x11d   :  { %v240_v57 = vadd.f32 %v239_v55, %v63_v46 }
 0x11e   :  { %564 = vtanh.f32 %v245_v54 }
 0x11f   :  { %566 = vtanh.f32 %v240_v57  ;;  %v468_v59 = vpop.f32.mrb[4].mxu0 }
 0x120   :  { %v255_v60 = vadd.f32 %v468_v59, %v78_v56  ;;  %v249_v61 = vpop.f32.mrb[5].mxu0 }
 0x121   :  { %v250_v62 = vadd.f32 %v249_v61, %v73_v58 }
 0x122   :  { %568 = vtanh.f32 %v255_v60 }
 0x123   :  { %570 = vtanh.f32 %v250_v62  ;;  %v471_v0 = vpop.f32.mrb[6].mxu0 }
 0x124   :  { %v561_v1 = vpop.eup %560  ;;  %v265_v3 = vadd.f32 %v471_v0, %v88_v63  ;;  %v259_v4 = vpop.f32.mrb[7].mxu0 }
 0x125   :  { %v563_v5 = vpop.eup %562  ;;  %v260_v6 = vadd.f32 %v259_v4, %v83_v2 }
 0x126   :  { %572 = vtanh.f32 %v265_v3  ;;  %v540_v7 = vpack.c.bf16 %v561_v1, %v563_v5 }
 0x127   :  { %574 = vtanh.f32 %v260_v6 }
 0x128   :  { %v565_v8 = vpop.eup %564  ;;  %541 = vmatpush3.bf16.msra.mxu1 %v540_v7 }
 0x129   :  { %v567_v9 = vpop.eup %566  ;;  %542 = vmatprep.subr.bf16.mxu1 %v601_v42 }
 0x12a   :  { %v543_v10 = vpack.c.bf16 %v565_v8, %v567_v9 }
 0x12c   :  { %v569_v11 = vpop.eup %568  ;;  %544 = vmatpush3.bf16.msra.mxu1 %v543_v10 }
 0x12d   :  { %v571_v12 = vpop.eup %570  ;;  %545 = vmatprep.subr.bf16.mxu1 %v601_v42 }
 0x12e   :  { %v546_v13 = vpack.c.bf16 %v569_v11, %v571_v12 }
 0x130   :  { %v573_v14 = vpop.eup %572  ;;  %547 = vmatpush3.bf16.msra.mxu1 %v546_v13 }
 0x131   :  { %v575_v15 = vpop.eup %574  ;;  %548 = vmatprep.subr.bf16.mxu1 %v601_v42 }
 0x132   :  { %v549_v16 = vpack.c.bf16 %v573_v14, %v575_v15 }
 0x134   :  { %550 = vmatpush3.bf16.msra.mxu1 %v549_v16 }
 0x137   :  { %489 = vmatmul.mubr.msk.f32.vlgmr.msra.gmra.mrb[0].mxu1 %vm281_vm3, %v276_v17 }
 0x20a   :  { %v351_v19 = vpop.f32.mrb[0].mxu1 }
 0x20b   :  { %v352_v20 = vadd.f32 %v351_v19, %v279_v18  ;;  %v490_v21 = vpop.f32.mrb[1].mxu1 }
 0x20d   :  { %355 = vst [vmem:[#allocation2] sm:$0xff] %v352_v20 }
 0x20e   :  { %587 = shalt.err (!%p584_p4)
}
 0x20f   :  { %s588_s3 = scalar_lea.hbm %s796_s4, 128 }
 0x210   :  { %p589_p5 = scmp.ne.s32.totalorder %s796_s4, %s588_s3  ;;  %p592_p6 = scmp.lt.u32.totalorder %s588_s3, %s796_s4 }
 0x212   :  { %p594_p7 = pnand %p592_p6, %p589_p5 }
 0x214   :  { %597 = shalt.err (!%p594_p7)
}
 0x215   :  { %365 = dma.vmem_to_hbm [thread:$0]  %s363_s1, 128, %s796_s4, [#allocation3]  }
 0x216   :  { %598 = dma.done.wait [#allocation3], 128  }
 0x217   :  { %599 = vsyncadd [#allocation3], 4294967168 }
 0x218   :  { %369 = vsyncpa [#allocation3], 1 }

</bundles_post_ra>
